<compile_context>
chip_gen: v5e
topology: v5e:2x2
jax: 0.10.0
libtpu: 0.0.40
codegen_flags: <defaults>
</compile_context>

<pallas_src>
import jax
import jax.numpy as jnp
from jax.experimental import pallas as pl
from jax.experimental.pallas import tpu as pltpu


def _gru_seq_kernel(x_ref, h0_ref, wih_ref, whh_ref, bi_ref, bh_ref,
                    hs_ref, h_scr):
    # x_ref : (1, B, I)   current timestep (lane axis = input features)
    # h0_ref: (B, H)      initial hidden state (read only at t == 0)
    # wih_ref: (I, 3H)    w_ih^T, VMEM-resident across the whole grid
    # whh_ref: (H, 3H)    w_hh^T, VMEM-resident across the whole grid
    # bi_ref/bh_ref: (1, 3H)  f32 biases
    # hs_ref: (1, B, H)   per-step output h_t
    # h_scr : (B, H) f32  recurrent carry (persists across grid steps)
    H = h_scr.shape[1]
    t = pl.program_id(0)

    @pl.when(t == 0)
    def _():
        h_scr[...] = h0_ref[...].astype(jnp.float32)

    h = h_scr[...]                                     # f32 carry
    x = x_ref[0]                                       # (B, I)

    # Two MXU dots, f32 accumulate; no zero-padded columns.
    gi = jnp.dot(x, wih_ref[...],
                 preferred_element_type=jnp.float32) + bi_ref[...]
    gh = jnp.dot(h.astype(whh_ref.dtype), whh_ref[...],
                 preferred_element_type=jnp.float32) + bh_ref[...]

    rz = gi[:, :2 * H] + gh[:, :2 * H]                 # lane-tile-aligned slices
    rt = jax.nn.sigmoid(rz[:, :H])
    zt = jax.nn.sigmoid(rz[:, H:])
    nt = jnp.tanh(gi[:, 2 * H:] + rt * gh[:, 2 * H:])
    ht = nt + zt * (h - nt)                            # == (1-z)*n + z*h

    h_scr[...] = ht                                    # f32 carry stays in VMEM
    hs_ref[0] = ht.astype(hs_ref.dtype)


def prepare_gru_weights(w_ih, w_hh, b_ih, b_hh, *, matmul_dtype=None):
    """One-time weight/bias preparation (hoisted out of the per-step path)."""
    wdt = matmul_dtype if matmul_dtype is not None else w_ih.dtype
    w_ih_t = w_ih.T.astype(wdt)                        # (I, 3H)
    w_hh_t = w_hh.T.astype(wdt)                        # (H, 3H)
    b_i = b_ih.reshape(1, -1).astype(jnp.float32)      # (1, 3H)
    b_h = b_hh.reshape(1, -1).astype(jnp.float32)      # (1, 3H)
    return w_ih_t, w_hh_t, b_i, b_h


def gru_sequence_v2(xs, h0, prepared, *, matmul_dtype=None):
    """Run T GRU steps in one pallas_call.

    xs: (T, I, B), h0: (H, B) -> hs: (T, H, B) (h_t for every step).
    """
    w_ih_t, w_hh_t, b_i, b_h = prepared
    T, I, B = xs.shape
    H = h0.shape[0]
    out_dtype = h0.dtype

    # Layout plumbing once per sequence (not per step): features -> lanes.
    xs_b = jnp.transpose(xs, (0, 2, 1))                # (T, B, I)
    if matmul_dtype is not None:
        xs_b = xs_b.astype(matmul_dtype)
    h0_b = h0.T                                        # (B, H)

    def const(shape):
        return pl.BlockSpec(shape, lambda t: (0,) * len(shape))

    grid_spec = pltpu.PrefetchScalarGridSpec(
        num_scalar_prefetch=0,
        grid=(T,),
        in_specs=[
            pl.BlockSpec((1, B, I), lambda t: (t, 0, 0)),   # x_t streamed
            const((B, H)),                                  # h0
            const((I, 3 * H)),                              # w_ih^T (resident)
            const((H, 3 * H)),                              # w_hh^T (resident)
            const((1, 3 * H)),                              # b_i
            const((1, 3 * H)),                              # b_h
        ],
        out_specs=pl.BlockSpec((1, B, H), lambda t: (t, 0, 0)),
        scratch_shapes=[pltpu.VMEM((B, H), jnp.float32)],   # f32 h carry
    )

    hs_b = pl.pallas_call(
        _gru_seq_kernel,
        out_shape=jax.ShapeDtypeStruct((T, B, H), out_dtype),
        grid_spec=grid_spec,
        compiler_params=pltpu.CompilerParams(
            dimension_semantics=("arbitrary",)),            # true recurrence
    )(xs_b, h0_b, w_ih_t, w_hh_t, b_i, b_h)

    return jnp.transpose(hs_b, (0, 2, 1))                   # (T, H, B)
    # TODO(synk): for large H on v7x, add a "parallel" grid axis over the 3H
    # gate columns so both TensorCores get work, and tile the resident weight.


def gru_cell_v2(x, h, w_ih, w_hh, b_ih, b_hh, *, matmul_dtype=None):
    """Single GRU step: x: (I, B), h: (H, B) -> h_t: (H, B)."""
    prepared = prepare_gru_weights(w_ih, w_hh, b_ih, b_hh,
                                   matmul_dtype=matmul_dtype)
    hs = gru_sequence_v2(x[None], h, prepared, matmul_dtype=matmul_dtype)
    return hs[0]


def gru_cell_v2_ref(x, h, w_ih, w_hh, b_ih, b_hh):
    """Plain-JAX reference mirroring the PyTorch forward exactly."""
    H = h.shape[0]
    hi = jax.lax.Precision.HIGHEST
    gi = jnp.matmul(w_ih, x, precision=hi)
    gh = jnp.matmul(w_hh, h, precision=hi)
    w_ir_x, w_iz_x, w_in_x = gi[:H], gi[H:2 * H], gi[2 * H:]
    w_hr_h, w_hz_h, w_hn_h = gh[:H], gh[H:2 * H], gh[2 * H:]
    b_ir, b_iz, b_in = b_ih[:H, None], b_ih[H:2 * H, None], b_ih[2 * H:, None]
    b_hr, b_hz, b_hn = b_hh[:H, None], b_hh[H:2 * H, None], b_hh[2 * H:, None]
    rt = jax.nn.sigmoid(w_ir_x + b_ir + w_hr_h + b_hr)
    zt = jax.nn.sigmoid(w_iz_x + b_iz + w_hz_h + b_hz)
    nt = jnp.tanh(w_in_x + b_in + rt * (w_hn_h + b_hn))
    return (1.0 - zt) * nt + zt * h


if __name__ == "__main__":
    # Small TPU-friendly shapes: H multiple of 128 (lane-aligned gate slices),
    # B = 8 fills one sublane tile, short sequence T = 4.
    input_size = 64
    hidden_size = 128
    batch = 8
    seq_len = 4

    key = jax.random.PRNGKey(0)
    k_wih, k_whh, k_bih, k_bhh, k_x, k_h = jax.random.split(key, 6)

    K = 1.0 / jnp.sqrt(jnp.float32(hidden_size))
    w_ih = jax.random.uniform(k_wih, (3 * hidden_size, input_size),
                              jnp.float32, minval=-K, maxval=K)
    w_hh = jax.random.uniform(k_whh, (3 * hidden_size, hidden_size),
                              jnp.float32, minval=-K, maxval=K)
    b_ih = jax.random.uniform(k_bih, (3 * hidden_size,), jnp.float32,
                              minval=-K, maxval=K)
    b_hh = jax.random.uniform(k_bhh, (3 * hidden_size,), jnp.float32,
                              minval=-K, maxval=K)

    # Feature-major inputs, as in the PyTorch module.
    xs = jax.random.normal(k_x, (seq_len, input_size, batch), jnp.float32)
    h0 = jax.random.normal(k_h, (hidden_size, batch), jnp.float32)

    # --- single-step check (exact GRUCellV2.forward semantics) ---------------
    ht = gru_cell_v2(xs[0], h0, w_ih, w_hh, b_ih, b_hh)
    jax.block_until_ready(ht)
    ht_ref = gru_cell_v2_ref(xs[0], h0, w_ih, w_hh, b_ih, b_hh)
    assert ht.shape == (hidden_size, batch)
    assert jnp.allclose(ht, ht_ref, atol=1e-4, rtol=1e-4), (
        float(jnp.max(jnp.abs(ht - ht_ref))))

    # --- whole sequence in ONE pallas_call (weights VMEM-resident) -----------
    prepared = prepare_gru_weights(w_ih, w_hh, b_ih, b_hh)
    hs = gru_sequence_v2(xs, h0, prepared)
    jax.block_until_ready(hs)
    assert hs.shape == (seq_len, hidden_size, batch)

    h_ref = h0
    for t in range(seq_len):
        h_ref = gru_cell_v2_ref(xs[t], h_ref, w_ih, w_hh, b_ih, b_hh)
        assert jnp.allclose(hs[t], h_ref, atol=1e-4, rtol=1e-4), (
            t, float(jnp.max(jnp.abs(hs[t] - h_ref))))

    print("KERNEL_OK")
</pallas_src>

<mosaic_0001>
module attributes {stable_mosaic.version = 11 : i64} {
  func.func @_gru_seq_kernel(%arg0: i32, %arg1: memref<1x8x64xf32, #tpu.memory_space<vmem>>, %arg2: memref<8x128xf32, #tpu.memory_space<vmem>>, %arg3: memref<64x384xf32, #tpu.memory_space<vmem>>, %arg4: memref<128x384xf32, #tpu.memory_space<vmem>>, %arg5: memref<1x384xf32, #tpu.memory_space<vmem>>, %arg6: memref<1x384xf32, #tpu.memory_space<vmem>>, %arg7: memref<1x8x128xf32, #tpu.memory_space<vmem>>, %arg8: memref<8x128xf32, #tpu.memory_space<vmem>>) attributes {dimension_semantics = [#tpu.dimension_semantics<arbitrary>], iteration_bounds = array<i64: 1>, scalar_prefetch = 0 : i64, scratch_operands = 1 : i64, tpu.core_type = #tpu.core_type<tc>, window_params = [{transform_indices = @transform_0, window_bounds = array<i64: 1, 8, 64>}, {pipeline_mode = #tpu.pipeline_mode<synchronous>, transform_indices = @transform_1, window_bounds = array<i64: 8, 128>}, {pipeline_mode = #tpu.pipeline_mode<synchronous>, transform_indices = @transform_2, window_bounds = array<i64: 64, 384>}, {pipeline_mode = #tpu.pipeline_mode<synchronous>, transform_indices = @transform_3, window_bounds = array<i64: 128, 384>}, {pipeline_mode = #tpu.pipeline_mode<synchronous>, transform_indices = @transform_4, window_bounds = array<i64: 1, 384>}, {pipeline_mode = #tpu.pipeline_mode<synchronous>, transform_indices = @transform_5, window_bounds = array<i64: 1, 384>}, {transform_indices = @transform_6, window_bounds = array<i64: 1, 8, 128>}]} {
    %c0_i32 = arith.constant 0 : i32
    %0 = arith.cmpi eq, %arg0, %c0_i32 : i32
    %1 = arith.extui %0 : i1 to i32
    %c0_i32_0 = arith.constant 0 : i32
    %2 = arith.cmpi ne, %1, %c0_i32_0 : i32
    scf.if %2 {
      %c0_21 = arith.constant 0 : index
      %c0_22 = arith.constant 0 : index
      %43 = vector.load %arg2[%c0_21, %c0_22] : memref<8x128xf32, #tpu.memory_space<vmem>>, vector<8x128xf32>
      %c0_23 = arith.constant 0 : index
      %c0_24 = arith.constant 0 : index
      %44 = vector.load %arg8[%c0_23, %c0_24] : memref<8x128xf32, #tpu.memory_space<vmem>>, vector<8x128xf32>
      tpu.vector_store %arg8[%c0_23, %c0_24], %43 {strides = array<i32>} : memref<8x128xf32, #tpu.memory_space<vmem>>, vector<8x128xf32>,
    } else {
    }
    %c0 = arith.constant 0 : index
    %c0_1 = arith.constant 0 : index
    %3 = vector.load %arg8[%c0, %c0_1] : memref<8x128xf32, #tpu.memory_space<vmem>>, vector<8x128xf32>
    %c0_2 = arith.constant 0 : index
    %c0_3 = arith.constant 0 : index
    %c0_4 = arith.constant 0 : index
    %4 = vector.load %arg1[%c0_2, %c0_3, %c0_4] : memref<1x8x64xf32, #tpu.memory_space<vmem>>, vector<1x8x64xf32>
    %5 = vector.shape_cast %4 : vector<1x8x64xf32> to vector<8x64xf32>
    %c0_5 = arith.constant 0 : index
    %c0_6 = arith.constant 0 : index
    %6 = vector.load %arg3[%c0_5, %c0_6] : memref<64x384xf32, #tpu.memory_space<vmem>>, vector<64x384xf32>
    %cst = arith.constant dense<0.000000e+00> : vector<8x384xf32>
    %7 = tpu.matmul %5, %6, %cst {dimension_numbers = #tpu.dot_dimension_numbers<[1], [0], [0], [1], [0, 0, 1, 1], [], []>} : vector<8x64xf32>, vector<64x384xf32>, vector<8x384xf32> -> vector<8x384xf32>
    %c0_7 = arith.constant 0 : index
    %c0_8 = arith.constant 0 : index
    %8 = vector.load %arg5[%c0_7, %c0_8] : memref<1x384xf32, #tpu.memory_space<vmem>>, vector<1x384xf32>
    %9 = vector.broadcast %8 : vector<1x384xf32> to vector<8x384xf32>
    %10 = arith.addf %7, %9 : vector<8x384xf32>
    %c0_9 = arith.constant 0 : index
    %c0_10 = arith.constant 0 : index
    %11 = vector.load %arg4[%c0_9, %c0_10] : memref<128x384xf32, #tpu.memory_space<vmem>>, vector<128x384xf32>
    %cst_11 = arith.constant dense<0.000000e+00> : vector<8x384xf32>
    %12 = tpu.matmul %3, %11, %cst_11 {dimension_numbers = #tpu.dot_dimension_numbers<[1], [0], [0], [1], [0, 0, 1, 1], [], []>} : vector<8x128xf32>, vector<128x384xf32>, vector<8x384xf32> -> vector<8x384xf32>
    %c0_12 = arith.constant 0 : index
    %c0_13 = arith.constant 0 : index
    %13 = vector.load %arg6[%c0_12, %c0_13] : memref<1x384xf32, #tpu.memory_space<vmem>>, vector<1x384xf32>
    %14 = vector.broadcast %13 : vector<1x384xf32> to vector<8x384xf32>
    %15 = arith.addf %12, %14 : vector<8x384xf32>
    %16 = vector.extract_strided_slice %10 {offsets = [0, 0], sizes = [8, 256], strides = [1, 1]} : vector<8x384xf32> to vector<8x256xf32>
    %17 = vector.extract_strided_slice %15 {offsets = [0, 0], sizes = [8, 256], strides = [1, 1]} : vector<8x384xf32> to vector<8x256xf32>
    %18 = arith.addf %16, %17 : vector<8x256xf32>
    %19 = vector.extract_strided_slice %18 {offsets = [0, 0], sizes = [8, 128], strides = [1, 1]} : vector<8x256xf32> to vector<8x128xf32>
    %20 = arith.negf %19 : vector<8x128xf32>
    %21 = math.exp %20 : vector<8x128xf32>
    %cst_14 = arith.constant 1.000000e+00 : f32
    %22 = vector.broadcast %cst_14 : f32 to vector<8x128xf32>
    %23 = arith.addf %22, %21 : vector<8x128xf32>
    %24 = arith.divf %22, %23 : vector<8x128xf32>
    %25 = vector.extract_strided_slice %18 {offsets = [0, 128], sizes = [8, 128], strides = [1, 1]} : vector<8x256xf32> to vector<8x128xf32>
    %26 = arith.negf %25 : vector<8x128xf32>
    %27 = math.exp %26 : vector<8x128xf32>
    %cst_15 = arith.constant 1.000000e+00 : f32
    %28 = vector.broadcast %cst_15 : f32 to vector<8x128xf32>
    %29 = arith.addf %28, %27 : vector<8x128xf32>
    %30 = arith.divf %28, %29 : vector<8x128xf32>
    %31 = vector.extract_strided_slice %10 {offsets = [0, 256], sizes = [8, 128], strides = [1, 1]} : vector<8x384xf32> to vector<8x128xf32>
    %32 = vector.extract_strided_slice %15 {offsets = [0, 256], sizes = [8, 128], strides = [1, 1]} : vector<8x384xf32> to vector<8x128xf32>
    %33 = arith.mulf %24, %32 : vector<8x128xf32>
    %34 = arith.addf %31, %33 : vector<8x128xf32>
    %35 = math.tanh %34 : vector<8x128xf32>
    %36 = arith.subf %3, %35 : vector<8x128xf32>
    %37 = arith.mulf %30, %36 : vector<8x128xf32>
    %38 = arith.addf %35, %37 : vector<8x128xf32>
    %c0_16 = arith.constant 0 : index
    %c0_17 = arith.constant 0 : index
    %39 = vector.load %arg8[%c0_16, %c0_17] : memref<8x128xf32, #tpu.memory_space<vmem>>, vector<8x128xf32>
    tpu.vector_store %arg8[%c0_16, %c0_17], %38 {strides = array<i32>} : memref<8x128xf32, #tpu.memory_space<vmem>>, vector<8x128xf32>,
    %c0_18 = arith.constant 0 : index
    %c0_19 = arith.constant 0 : index
    %c0_20 = arith.constant 0 : index
    %40 = vector.load %arg7[%c0_18, %c0_19, %c0_20] : memref<1x8x128xf32, #tpu.memory_space<vmem>>, vector<1x8x128xf32>
    %41 = vector.shape_cast %40 : vector<1x8x128xf32> to vector<8x128xf32>
    %42 = vector.shape_cast %38 : vector<8x128xf32> to vector<1x8x128xf32>
    tpu.vector_store %arg7[%c0_18, %c0_19, %c0_20], %42 {strides = array<i32>} : memref<1x8x128xf32, #tpu.memory_space<vmem>>, vector<1x8x128xf32>,
    return
  }
  func.func @transform_0(%arg0: i32) -> (i32, i32, i32) {
    %c0_i32 = arith.constant 0 : i32
    %c0_i32_0 = arith.constant 0 : i32
    %c0_i32_1 = arith.constant 0 : i32
    return %arg0, %c0_i32, %c0_i32_0 : i32, i32, i32
  }
  func.func @transform_1(%arg0: i32) -> (i32, i32) {
    %c0_i32 = arith.constant 0 : i32
    %c0_i32_0 = arith.constant 0 : i32
    %c0_i32_1 = arith.constant 0 : i32
    return %c0_i32, %c0_i32_0 : i32, i32
  }
  func.func @transform_2(%arg0: i32) -> (i32, i32) {
    %c0_i32 = arith.constant 0 : i32
    %c0_i32_0 = arith.constant 0 : i32
    %c0_i32_1 = arith.constant 0 : i32
    return %c0_i32, %c0_i32_0 : i32, i32
  }
  func.func @transform_3(%arg0: i32) -> (i32, i32) {
    %c0_i32 = arith.constant 0 : i32
    %c0_i32_0 = arith.constant 0 : i32
    %c0_i32_1 = arith.constant 0 : i32
    return %c0_i32, %c0_i32_0 : i32, i32
  }
  func.func @transform_4(%arg0: i32) -> (i32, i32) {
    %c0_i32 = arith.constant 0 : i32
    %c0_i32_0 = arith.constant 0 : i32
    %c0_i32_1 = arith.constant 0 : i32
    return %c0_i32, %c0_i32_0 : i32, i32
  }
  func.func @transform_5(%arg0: i32) -> (i32, i32) {
    %c0_i32 = arith.constant 0 : i32
    %c0_i32_0 = arith.constant 0 : i32
    %c0_i32_1 = arith.constant 0 : i32
    return %c0_i32, %c0_i32_0 : i32, i32
  }
  func.func @transform_6(%arg0: i32) -> (i32, i32, i32) {
    %c0_i32 = arith.constant 0 : i32
    %c0_i32_0 = arith.constant 0 : i32
    %c0_i32_1 = arith.constant 0 : i32
    return %arg0, %c0_i32, %c0_i32_0 : i32, i32, i32
  }
}

</mosaic_0001>

<bundles_post_ra>
// kernel: tpu_custom_call.1
= control target key start
LH: loop header
LB: loop body
LE: loop exit
PB: predicated region body
PF: predicated region fallthrough
CT: control target
= control target key end

     0   :  { %11 = vsyncpa [#allocation4], 0  ;;  %s636_s0 = inlined_call_operand.hbm [shape: f32[1,8,64], index: 0, kind: input, shape index: {}]   ;;  %s637_s1 = inlined_call_operand.hbm [shape: f32[8,128], index: 1, kind: input, shape index: {}]   ;;  %s638_s2 = inlined_call_operand.hbm [shape: f32[64,384], index: 2, kind: input, shape index: {}]   ;;  %s639_s3 = inlined_call_operand.hbm [shape: f32[128,384], index: 3, kind: input, shape index: {}]   ;;  %s640_s4 = inlined_call_operand.vmem [shape: f32[1,384], index: 4, kind: input, shape index: {}]   ;;  %s641_s5 = inlined_call_operand.hbm [shape: f32[1,384], index: 5, kind: input, shape index: {}]   ;;  %s642_s6 = inlined_call_operand.hbm [shape: f32[1,8,128], index: 6, kind: output, shape index: {}]  }
   0x1   :  { %12 = vsyncpa [#allocation7], 0 }
   0x2   :  { %13 = vsyncpa [#allocation10], 0  ;;  %s31_s23 = sshll.u32 %s637_s1, 4  ;;  %s32_s23 = int_to_ptr.hbm [resolvable:$true] %s31_s23 }
   0x3   :  { %14 = vsyncpa [#allocation5], 0  ;;  %s558_s24 = smov [#allocation6]   ;;  %s54_s28 = sshll.u32 %s639_s3, 4  ;;  %s55_s28 = int_to_ptr.hbm [resolvable:$true] %s54_s28 }
   0x4   :  { %s33_s25 = sshll.u32 %s558_s24, 4  ;;  %s559_s29 = smov [#allocation9]   ;;  %s34_s25 = int_to_ptr.vmem [resolvable:$true] %s33_s25 }
   0x5   :  { %36 = dma.hbm_to_vmem [thread:$0]  %s32_s23, 128, %s34_s25, [#allocation7]  }
   0x6   :  { %s56_s30 = sshll.u32 %s559_s29, 4  ;;  %s20_s9 = sshll.u32 %s636_s0, 4  ;;  %s57_s30 = int_to_ptr.vmem [resolvable:$true] %s56_s30  ;;  %s21_s9 = int_to_ptr.hbm [resolvable:$true] %s20_s9 }
   0x7   :  { %s560_s1 = smov 384   ;;  %s561_s10 = smov 24  }
   0x8   :  { %62 = dma.hbm_to_vmem [thread:$0]  %s55_s28, 6144, %s57_s30, [#allocation10], %s560_s1, %s560_s1, %s561_s10  }
   0x9   :  { %s41_s13 = sshll.u32 %s638_s2, 4  ;;  %s562_s14 = smov [#allocation3]   ;;  %s42_s13 = int_to_ptr.hbm [resolvable:$true] %s41_s13 }
   0xa   :  { %s22_s15 = sshll.u32 %s562_s14, 4  ;;  %s563_s3 = smov [#allocation8]   ;;  %s23_s15 = int_to_ptr.vmem [resolvable:$true] %s22_s15 }
   0xb   :  { %25 = dma.hbm_to_vmem [thread:$0]  %s21_s9, 128, %s23_s15, [#allocation4]  }
   0xc   :  { %s43_s16 = sshll.u32 %s563_s3, 4  ;;  %s70_s0 = sshll.u32 %s641_s5, 4  ;;  %s44_s16 = int_to_ptr.vmem [resolvable:$true] %s43_s16  ;;  %s71_s0 = int_to_ptr.hbm [resolvable:$true] %s70_s0 }
   0xd   :  { %49 = dma.hbm_to_vmem [thread:$0]  %s42_s13, 3072, %s44_s16, [#allocation7], %s560_s1, %s560_s1, %s561_s10  }
   0xe   :  { %s564_s19 = smov [#allocation11]  }
   0xf   :  { %s72_s20 = sshll.u32 %s564_s19, 4  ;;  %s73_s20 = int_to_ptr.vmem [resolvable:$true] %s72_s20 }
  0x10   :  { %75 = dma.hbm_to_vmem [thread:$0]  %s71_s0, 48, %s73_s20, [#allocation10]  }
  0x11   :  { %550 = dma.done.wait [#allocation4], 128  }
  0x12   :  { %551 = vsyncadd [#allocation4], 4294967168 }
  0x13   :  { %552 = dma.done.wait [#allocation7], 3200  }
  0x14   :  { %553 = vsyncadd [#allocation7], 4294964096 }
  0x15   :  { %554 = dma.done.wait [#allocation10], 6192  }
  0x16   :  { %555 = vsyncadd [#allocation10], 4294961104  ;;  %v245_v0 = vld [vmem:[#allocation9 + $0x168] sm:$0xff]  ;;  %v242_v1 = vld [vmem:[#allocation9 + $0x150] sm:$0xff]  ;;  %vm136_vm0 = vcmask 523264   ;;  %s371_s24 = sshll.u32 %s642_s6, 4  ;;  %s372_s24 = int_to_ptr.hbm [resolvable:$true] %s371_s24 }
  0x17   :  { %256 = vmatpush.msra.mxu3 %v245_v0  ;;  %v246_v2 = vld [vmem:[#allocation9 + $0x170] sm:$0xff]  ;;  %v239_v3 = vld [vmem:[#allocation9 + $0x138] sm:$0xff]  ;;  %v240_v5 = vld [vmem:[#allocation9 + $0x140] sm:$0xff] }
  0x18   :  { %276 = vmatpush.msra.mxu0 %v246_v2  ;;  %v243_v4 = vld [vmem:[#allocation9 + $0x158] sm:$0xff]  ;;  %v236_v6 = vld [vmem:[#allocation9 + $0x120] sm:$0xff]  ;;  %v125_v7 = vld [vmem:[#allocation8 + $0xa8] sm:$0xff] }
  0x19   :  { %257 = vmatpush.msra.mxu3 %v242_v1  ;;  %v237_v8 = vld [vmem:[#allocation9 + $0x128] sm:$0xff]  ;;  %148 = vmatpush.msra.mxu2 %v125_v7  ;;  %v122_v9 = vld [vmem:[#allocation8 + $0x90] sm:$0xff]  ;;  %v119_v11 = vld [vmem:[#allocation8 + $0x78] sm:$0xff] }
  0x1a   :  { %277 = vmatpush.msra.mxu0 %v243_v4  ;;  %v233_v10 = vld [vmem:[#allocation9 + $0x108] sm:$0xff]  ;;  %v234_v12 = vld [vmem:[#allocation9 + $0x110] sm:$0xff]  ;;  %v116_v15 = vld [vmem:[#allocation8 + $0x60] sm:$0xff] }
  0x1b   :  { %258 = vmatpush.msra.mxu3 %v239_v3  ;;  %149 = vmatpush.msra.mxu2 %v122_v9  ;;  %v126_v13 = vld [vmem:[#allocation8 + $0xb0] sm:$0xff]  ;;  %v123_v16 = vld [vmem:[#allocation8 + $0x98] sm:$0xff]  ;;  %v113_v19 = vld [vmem:[#allocation8 + $0x48] sm:$0xff] }
  0x1c   :  { %278 = vmatpush.msra.mxu0 %v240_v5  ;;  %v230_v14 = vld [vmem:[#allocation9 + $0xf0] sm:$0xff]  ;;  %168 = vmatpush.msra.mxu1 %v126_v13  ;;  %v231_v17 = vld [vmem:[#allocation9 + $0xf8] sm:$0xff]  ;;  %v120_v20 = vld [vmem:[#allocation8 + $0x80] sm:$0xff] }
  0x1d   :  { %259 = vmatpush.msra.mxu3 %v236_v6  ;;  %150 = vmatpush.msra.mxu2 %v119_v11  ;;  %v227_v18 = vld [vmem:[#allocation9 + $0xd8] sm:$0xff]  ;;  %v228_v21 = vld [vmem:[#allocation9 + $0xe0] sm:$0xff]  ;;  %v117_v22 = vld [vmem:[#allocation8 + $0x68] sm:$0xff] }
  0x1e   :  { %279 = vmatpush.msra.mxu0 %v237_v8  ;;  %169 = vmatpush.msra.mxu1 %v123_v16  ;;  %v224_v23 = vld [vmem:[#allocation9 + $0xc0] sm:$0xff]  ;;  %v110_v24 = vld [vmem:[#allocation8 + $0x30] sm:$0xff]  ;;  %v225_v25 = vld [vmem:[#allocation9 + $0xc8] sm:$0xff] }
  0x1f   :  { %260 = vmatpush.msra.mxu3 %v233_v10  ;;  %151 = vmatpush.msra.mxu2 %v116_v15  ;;  %v114_v26 = vld [vmem:[#allocation8 + $0x50] sm:$0xff]  ;;  %v221_v27 = vld [vmem:[#allocation9 + $0xa8] sm:$0xff]  ;;  %v107_v28 = vld [vmem:[#allocation8 + $0x18] sm:$0xff] }
  0x20   :  { %280 = vmatpush.msra.mxu0 %v234_v12  ;;  %170 = vmatpush.msra.mxu1 %v120_v20  ;;  %v222_v29 = vld [vmem:[#allocation9 + $0xb0] sm:$0xff]  ;;  %v111_v30 = vld [vmem:[#allocation8 + $0x38] sm:$0xff]  ;;  %v104_v32 = vld [vmem:[#allocation8] sm:$0xff] }
  0x21   :  { %261 = vmatpush.msra.mxu3 %v230_v14  ;;  %152 = vmatpush.msra.mxu2 %v113_v19  ;;  %v218_v31 = vld [vmem:[#allocation9 + $0x90] sm:$0xff]  ;;  %v219_v33 = vld [vmem:[#allocation9 + $0x98] sm:$0xff]  ;;  %v108_v36 = vld [vmem:[#allocation8 + $0x20] sm:$0xff] }
  0x22   :  { %281 = vmatpush.msra.mxu0 %v231_v17  ;;  %171 = vmatpush.msra.mxu1 %v117_v22  ;;  %v616_v34 = vld [vmem:[#allocation3] sm:$0xff]  ;;  %v215_v35 = vld [vmem:[#allocation9 + $0x78] sm:$0xff]  ;;  %v216_v37 = vld [vmem:[#allocation9 + $0x80] sm:$0xff] }
  0x23   :  { %262 = vmatpush.msra.mxu3 %v227_v18  ;;  %153 = vmatpush.msra.mxu2 %v110_v24  ;;  %v127_v38 = vld [vmem:[#allocation8 + $0xb8] sm:$0xff]  ;;  %v212_v39 = vld [vmem:[#allocation9 + $0x60] sm:$0xff]  ;;  %v105_v40 = vld [vmem:[#allocation8 + $0x8] sm:$0xff] }
  0x24   :  { %282 = vmatpush.msra.mxu0 %v228_v21  ;;  %172 = vmatpush.msra.mxu1 %v114_v26  ;;  %v213_v41 = vld [vmem:[#allocation9 + $0x68] sm:$0xff]  ;;  %v247_v42 = vld [vmem:[#allocation9 + $0x178] sm:$0xff]  ;;  %v210_v44 = vld [vmem:[#allocation9 + $0x50] sm:$0xff] }
  0x25   :  { %263 = vmatpush.msra.mxu3 %v224_v23  ;;  %154 = vmatpush.msra.mxu2 %v107_v28  ;;  %v209_v43 = vld [vmem:[#allocation9 + $0x48] sm:$0xff]  ;;  %v244_v45 = vld [vmem:[#allocation9 + $0x160] sm:$0xff]  ;;  %v206_v46 = vld [vmem:[#allocation9 + $0x30] sm:$0xff] }
  0x26   :  { %283 = vmatpush.msra.mxu0 %v225_v25  ;;  %173 = vmatpush.msra.mxu1 %v111_v30  ;;  %v124_v47 = vld [vmem:[#allocation8 + $0xa0] sm:$0xff]  ;;  %v207_v48 = vld [vmem:[#allocation9 + $0x38] sm:$0xff]  ;;  %v241_v49 = vld [vmem:[#allocation9 + $0x148] sm:$0xff] }
  0x27   :  { %264 = vmatpush.msra.mxu3 %v221_v27  ;;  %155 = vmatpush.msra.mxu2 %v104_v32  ;;  %v203_v50 = vld [vmem:[#allocation9 + $0x18] sm:$0xff]  ;;  %v121_v51 = vld [vmem:[#allocation8 + $0x88] sm:$0xff]  ;;  %v204_v52 = vld [vmem:[#allocation9 + $0x20] sm:$0xff] }
  0x28   :  { %284 = vmatpush.msra.mxu0 %v222_v29  ;;  %383 = vmatmul.msk.f32.vlgmr.msra.gmra.mxu2 %vm136_vm0, %v616_v34  ;;  %v238_v53 = vld [vmem:[#allocation9 + $0x130] sm:$0xff]  ;;  %v200_v54 = vld [vmem:[#allocation9] sm:$0xff]  ;;  %v622_v56 = vld [vmem:[#allocation6] sm:$0xff] }
  0x29   :  { %265 = vmatpush.msra.mxu3 %v218_v31  ;;  %174 = vmatpush.msra.mxu1 %v108_v36  ;;  %v118_v55 = vld [vmem:[#allocation8 + $0x70] sm:$0xff]  ;;  %v201_v57 = vld [vmem:[#allocation9 + $0x8] sm:$0xff]  ;;  %v235_v58 = vld [vmem:[#allocation9 + $0x118] sm:$0xff] }
  0x2a   :  { %285 = vmatpush.msra.mxu0 %v219_v33  ;;  %188 = vmatpush.msrb.mxu2 %v127_v38  ;;  %v115_v59 = vld [vmem:[#allocation8 + $0x58] sm:$0xff]  ;;  %v232_v60 = vld [vmem:[#allocation9 + $0x100] sm:$0xff]  ;;  %v229_v62 = vld [vmem:[#allocation9 + $0xe8] sm:$0xff] }
  0x2b   :  { %266 = vmatpush.msra.mxu3 %v215_v35  ;;  %175 = vmatpush.msra.mxu1 %v105_v40  ;;  %v112_v61 = vld [vmem:[#allocation8 + $0x40] sm:$0xff]  ;;  %v109_v63 = vld [vmem:[#allocation8 + $0x28] sm:$0xff]  ;;  %v226_v0 = vld [vmem:[#allocation9 + $0xd0] sm:$0xff] }
  0x2c   :  { %286 = vmatpush.msra.mxu0 %v216_v37  ;;  %384 = vmatmul.msk.f32.vlgmr.msra.gmra.mxu1 %vm136_vm0, %v616_v34  ;;  %v106_v1 = vld [vmem:[#allocation8 + $0x10] sm:$0xff]  ;;  %v223_v2 = vld [vmem:[#allocation9 + $0xb8] sm:$0xff]  ;;  %v220_v3 = vld [vmem:[#allocation9 + $0xa0] sm:$0xff] }
  0x2d   :  { %267 = vmatpush.msra.mxu3 %v212_v39  ;;  %296 = vmatpush.msrb.mxu1 %v247_v42  ;;  %v217_v4 = vld [vmem:[#allocation9 + $0x88] sm:$0xff]  ;;  %v214_v5 = vld [vmem:[#allocation9 + $0x70] sm:$0xff]  ;;  %v211_v6 = vld [vmem:[#allocation9 + $0x58] sm:$0xff] }
  0x2e   :  { %287 = vmatpush.msra.mxu0 %v213_v41  ;;  %189 = vmatpush.msrb.mxu2 %v124_v47  ;;  %v208_v7 = vld [vmem:[#allocation9 + $0x40] sm:$0xff]  ;;  %v205_v8 = vld [vmem:[#allocation9 + $0x28] sm:$0xff]  ;;  %v202_v9 = vld [vmem:[#allocation9 + $0x10] sm:$0xff] }
  0x2f   :  { %268 = vmatpush.msra.mxu3 %v209_v43  ;;  %297 = vmatpush.msrb.mxu1 %v244_v45  ;;  %v128_v10 = vld [vmem:[%s640_s4] sm:$0x7]  ;;  %v248_v11 = vld [vmem:[#allocation11] sm:$0x7]  ;;  %s565_s4 = smov [#allocation12]  }
  0x30   :  { %288 = vmatpush.msra.mxu0 %v210_v44  ;;  %190 = vmatpush.msrb.mxu2 %v121_v51  ;;  %v131_v12 = vperm.slane %v128_v10, 1  ;;  %v251_v14 = vperm.slane %v248_v11, 1  ;;  %v130_v16 = vperm.slane %v128_v10, 0  ;;  %v250_v20 = vperm.slane %v248_v11, 0  ;;  %s369_s21 = sshll.u32 %s565_s4, 4  ;;  %s370_s21 = int_to_ptr.vmem [resolvable:$true] %s369_s21 }
  0x31   :  { %269 = vmatpush.msra.mxu3 %v206_v46  ;;  %298 = vmatpush.msrb.mxu1 %v241_v49  ;;  %v252_v35 = vperm.slane %v248_v11, 2  ;;  %v132_v42 = vperm.slane %v128_v10, 2 }
  0x32   :  { %289 = vmatpush.msra.mxu0 %v207_v48  ;;  %191 = vmatpush.msrb.mxu2 %v118_v55 }
  0x33   :  { %270 = vmatpush.msra.mxu3 %v203_v50  ;;  %299 = vmatpush.msrb.mxu1 %v238_v53 }
  0x34   :  { %290 = vmatpush.msra.mxu0 %v204_v52  ;;  %192 = vmatpush.msrb.mxu2 %v115_v59 }
  0x35   :  { %271 = vmatpush.msra.mxu3 %v200_v54  ;;  %300 = vmatpush.msrb.mxu1 %v235_v58 }
  0x36   :  { %272 = vmatmul.f32.vlgmr.msra.gmra.mxu3 %v622_v56  ;;  %291 = vmatpush.msra.mxu0 %v201_v57 }
  0x37   :  { %292 = vmatmul.f32.vlgmr.msra.gmra.mxu0 %v622_v56  ;;  %301 = vmatpush.msrb.mxu1 %v232_v60 }
  0x38   :  { %193 = vmatpush.msrb.mxu2 %v112_v61 }
  0x39   :  { %302 = vmatpush.msrb.mxu1 %v229_v62 }
  0x3a   :  { %194 = vmatpush.msrb.mxu2 %v109_v63 }
  0x3b   :  { %303 = vmatpush.msrb.mxu1 %v226_v0 }
  0x3c   :  { %195 = vmatpush.msrb.mxu2 %v106_v1 }
  0x3d   :  { %304 = vmatpush.msrb.mxu1 %v223_v2  ;;  %385 = vmatmul.msk.f32.vlgmr.msrb.gmra.mxu2 %vm136_vm0, %v616_v34 }
  0x3f   :  { %305 = vmatpush.msrb.mxu1 %v220_v3 }
  0x41   :  { %306 = vmatpush.msrb.mxu1 %v217_v4 }
  0x43   :  { %307 = vmatpush.msrb.mxu1 %v214_v5 }
  0x45   :  { %308 = vmatpush.msrb.mxu1 %v211_v6 }
  0x47   :  { %309 = vmatpush.msrb.mxu1 %v208_v7 }
  0x49   :  { %310 = vmatpush.msrb.mxu1 %v205_v8 }
  0x4b   :  { %311 = vmatpush.msrb.mxu1 %v202_v9 }
  0x4c   :  { %312 = vmatmul.f32.vlgmr.msrb.gmra.mxu1 %v622_v56 }
  0xa9   :  { %v177_v13 = vpop.f32.mrf.mxu1 }
  0xaa   :  { %v178_v15 = vadd.f32 %v177_v13, %v131_v12 }
  0xab   :  { %v157_v18 = vpop.f32.mrf.mxu2 }
  0xac   :  { %v158_v22 = vadd.f32 %v157_v18, %v130_v16 }
  0xb4   :  { %v293_v17 = vpop.f32.mrf.mxu0 }
  0xb5   :  { %v294_v19 = vadd.f32 %v293_v17, %v251_v14 }
  0xb7   :  { %v317_v21 = vadd.f32 %v294_v19, %v178_v15 }
  0xb9   :  { %v273_v23 = vpop.f32.mrf.mxu3  ;;  %v387_v24 = vmul.f32 -1.442695, %v317_v21 }
  0xba   :  { %v274_v25 = vadd.f32 %v273_v23, %v250_v20 }
  0xbb   :  { %396 = vpow2.f32 %v387_v24 }
  0xbc   :  { %v316_v26 = vadd.f32 %v274_v25, %v158_v22 }
  0xbe   :  { %v386_v27 = vmul.f32 -1.442695, %v316_v26 }
  0xc0   :  { %398 = vpow2.f32 %v386_v27  ;;  %v197_v43 = vpop.f32.mrf.mxu2 }
  0xc1   :  { %v397_v28 = vpop.eup %396  ;;  %v198_v49 = vadd.f32 %v197_v43, %v132_v42 }
  0xc2   :  { %v340_v30 = vadd.f32 1.0, %v397_v28 }
  0xc4   :  { %vm346_vm5 = vweird.f32 %v340_v30  ;;  %v352_v54 = vand.u32 2147483648, %v340_v30  ;;  %v350_v57 = vand.u32 2147483647, %v340_v30 }
  0xc6   :  { %v399_v29 = vpop.eup %398  ;;  %v353_v58 = vor.u32 1.1754944e-38, %v352_v54  ;;  %vm351_vm8 = vcmp.eq.f32.partialorder %v350_v57, 8.507059e+37 }
  0xc7   :  { %v321_v31 = vadd.f32 1.0, %v399_v29 }
  0xc9   :  { %400 = vrcp.f32 %v321_v31  ;;  %v313_v38 = vpop.f32.mrf.mxu1  ;;  %v333_v39 = vand.u32 2147483648, %v321_v31  ;;  %v331_v41 = vand.u32 2147483647, %v321_v31  ;;  %vm327_vm2 = vweird.f32 %v321_v31 }
  0xca   :  { %402 = vrcp.f32 %v340_v30  ;;  %v314_v44 = vadd.f32 %v313_v38, %v252_v35 }
  0xcb   :  { %v334_v47 = vor.u32 1.1754944e-38, %v333_v39  ;;  %vm332_vm4 = vcmp.eq.f32.partialorder %v331_v41, 8.507059e+37 }
  0xcf   :  { %v401_v32 = vpop.eup %400 }
  0xd0   :  { %v403_v33 = vpop.eup %402  ;;  %v323_v34 = vmul.f32 %v401_v32, %v321_v31  ;;  %vm328_vm1 = vweird.f32 %v401_v32 }
  0xd1   :  { %v342_v37 = vmul.f32 %v403_v33, %v340_v30  ;;  %vm329_vm3 = vmor %vm327_vm2, %vm328_vm1  ;;  %vm347_vm6 = vweird.f32 %v403_v33 }
  0xd2   :  { %v324_v36 = vsub.f32 1.0, %v323_v34  ;;  %vm348_vm7 = vmor %vm346_vm5, %vm347_vm6 }
  0xd3   :  { %v343_v46 = vsub.f32 1.0, %v342_v37 }
  0xd4   :  { %v325_v40 = vmul.f32 %v401_v32, %v324_v36 }
  0xd5   :  { %v344_v52 = vmul.f32 %v403_v33, %v343_v46 }
  0xd6   :  { %v326_v45 = vadd.f32 %v401_v32, %v325_v40 }
  0xd7   :  { %v345_v55 = vadd.f32 %v403_v33, %v344_v52 }
  0xd8   :  { %v330_v48 = vsel %vm329_vm3, %v401_v32, %v326_v45 }
  0xd9   :  { %v335_v50 = vsel %vm332_vm4, %v334_v47, %v330_v48  ;;  %v349_v59 = vsel %vm348_vm7, %v403_v33, %v345_v55 }
  0xda   :  { %v356_v51 = vmul.f32 %v335_v50, %v314_v44  ;;  %v354_v62 = vsel %vm351_vm8, %v353_v58, %v349_v59 }
  0xdc   :  { %v357_v53 = vadd.f32 %v356_v51, %v198_v49 }
  0xde   :  { %404 = vtanh.f32 %v357_v53 }
  0xe4   :  { %v405_v60 = vpop.eup %404 }
  0xe5   :  { %v359_v61 = vsub.f32 %v622_v56, %v405_v60 }
  0xe7   :  { %v360_v63 = vmul.f32 %v359_v61, %v354_v62 }
  0xe9   :  { %v361_v0 = vadd.f32 %v405_v60, %v360_v63 }
  0xeb   :  { %363 = vst [vmem:[#allocation12] sm:$0xff] %v361_v0 }
  0xec   :  { %374 = dma.vmem_to_hbm [thread:$0]  %s370_s21, 128, %s372_s24, [#allocation5]  }
  0xed   :  { %556 = dma.done.wait [#allocation5], 128  }
  0xee   :  { %557 = vsyncadd [#allocation5], 4294967168 }
  0xef   :  { %379 = vsyncpa [#allocation4], 1 }
  0xf0   :  { %380 = vsyncpa [#allocation7], 1 }
  0xf1   :  { %381 = vsyncpa [#allocation10], 1 }
  0xf2   :  { %382 = vsyncpa [#allocation5], 1 }

</bundles_post_ra>
